<compile_context>
chip_gen: v7x
topology: tpu7x:2x2x1
jax: 0.10.0
libtpu: 0.0.40
codegen_flags: <defaults>
</compile_context>

<pallas_src>
import math
import numpy as np

import jax
import jax.numpy as jnp
from jax.experimental import pallas as pl
from jax.experimental.pallas import tpu as pltpu

_NS = 8  # augmented carry width: 4 filter states + 1 previous input + 3 zero pad


def _build_cell_matrices(r, f, sample_rate,
                         gf=1.5936, gr=1.0462, gain=2.9421):
    """Mirror of MoogVCFRFModelCell.update_matrices (float32, per-step form).

    gf / gr / gain are the nn.Parameter init values of the module (the 'gain'
    Parameter shadows the 'gain' buffer in PyTorch's nn.Module.__setattr__).
    """
    w = np.float32(2.0 * math.pi * gf * f)
    A = np.array([[-w, 0.0, 0.0, -4.0 * w * gr * r],
                  [w, -w, 0.0, 0.0],
                  [0.0, w, -w, 0.0],
                  [0.0, 0.0, w, -w]], dtype=np.float32)
    Bcol = np.array([w, 0.0, 0.0, 0.0], dtype=np.float32)      # B (4,1) flattened
    Crow = np.array([0.0, 0.0, 0.0, gain], dtype=np.float32)   # C (1,4) flattened
    k = np.float32(1.0 / sample_rate)
    I = np.eye(4, dtype=np.float32)
    kA2 = (k * A / 2.0).astype(np.float32)
    inv_I_minus_kAdt = np.linalg.inv(I - kA2).astype(np.float32)
    I_plus_kAdt = (I + kA2).astype(np.float32)
    k_mul_b_div_two = (k * Bcol / 2.0).astype(np.float32)
    return inv_I_minus_kAdt, I_plus_kAdt, k_mul_b_div_two, Crow


def _build_chunk_operators(r, f, sample_rate, T,
                           gf=1.5936, gr=1.0462, gain=2.9421):
    """Host-side (float64) construction of the per-chunk matmul operators.

    Per-step fused recurrence:  x_n = M x_{n-1} + d * (u_n + u_{n-1}),  y_n = C x_n
    with M = inv(I - kA/2)(I + kA/2), d = inv(I - kA/2)(k*B/2).

    For a chunk of T samples with carry z0 = [x0; u_prev; 0...]:
      y[t]  = sum_j H'[t, j] u[j] + Phi[t, :] @ z0
      z_end = Ws @ z0 + Wi @ u
    Returns the transposed operators (batch rows on sublanes in the kernel).
    """
    w = 2.0 * math.pi * gf * f
    A = np.array([[-w, 0.0, 0.0, -4.0 * w * gr * r],
                  [w, -w, 0.0, 0.0],
                  [0.0, w, -w, 0.0],
                  [0.0, 0.0, w, -w]], dtype=np.float64)
    Bcol = np.array([w, 0.0, 0.0, 0.0], dtype=np.float64)
    Crow = np.array([0.0, 0.0, 0.0, gain], dtype=np.float64)
    k = 1.0 / sample_rate
    I4 = np.eye(4, dtype=np.float64)

    invM = np.linalg.inv(I4 - k * A / 2.0)
    M = invM @ (I4 + k * A / 2.0)          # per-step state transition (4,4)
    d = invM @ (k * Bcol / 2.0)            # per-step input injection  (4,)

    # Powers of M: Mp[m] = M^m, m = 0..T
    Mp = np.empty((T + 1, 4, 4), dtype=np.float64)
    Mp[0] = I4
    for m in range(1, T + 1):
        Mp[m] = Mp[m - 1] @ M

    g = Mp[:T] @ d                          # (T, 4): g[m] = M^m d
    h = g @ Crow                            # (T,)  : h[m] = C M^m d

    # H'[t, j] = h[t-j] + h[t-j-1] (j < t), h[0] (j == t), 0 (j > t)   -- causal
    t_idx = np.arange(T)[:, None]
    j_idx = np.arange(T)[None, :]
    diff = t_idx - j_idx
    hh = np.where(diff >= 0, h[np.clip(diff, 0, T - 1)], 0.0)
    hh1 = np.where(diff - 1 >= 0, h[np.clip(diff - 1, 0, T - 1)], 0.0)
    Hp = hh + hh1                           # (T, T)

    # Phi[t, 0:4] = C M^{t+1};  Phi[t, 4] = h[t]   (u_prev contribution)
    PhiA = np.zeros((T, _NS), dtype=np.float64)
    PhiA[:, :4] = np.einsum('tij,i->tj', Mp[1:T + 1], Crow)
    PhiA[:, 4] = h

    # Ws: carry-from-carry.  Wi: carry-from-input.
    Wst = np.zeros((_NS, _NS), dtype=np.float64)
    Wst[:4, :4] = Mp[T]
    Wst[:4, 4] = Mp[T - 1] @ d

    Win = np.zeros((_NS, T), dtype=np.float64)
    gin = g[::-1].T                          # (4, T): col j = M^{T-1-j} d
    gin2 = np.zeros((4, T), dtype=np.float64)
    if T > 1:
        gin2[:, :T - 1] = g[::-1][1:].T      # col j = M^{T-2-j} d  (j <= T-2)
    Win[:4, :] = gin + gin2
    Win[4, T - 1] = 1.0                      # new u_prev = last input of chunk

    return (Hp.T.astype(np.float32),         # (T, T)
            PhiA.T.astype(np.float32),       # (NS, T)
            Wst.T.astype(np.float32),        # (NS, NS)
            Win.T.astype(np.float32))        # (T, NS)


def _moog_chunk_kernel(ht_ref, pt_ref, wst_ref, wit_ref,   # resident operators
                       u_ref, y_ref,                        # (BB, T) chunk blocks
                       z_sc):                               # (BB, NS) carry state
    # New batch block -> reset carry (zero initial state & zero previous input).
    @pl.when(pl.program_id(1) == 0)
    def _init():
        z_sc[...] = jnp.zeros_like(z_sc)

    u = u_ref[...]                  # (BB, T)  time on lanes
    z0 = z_sc[...]                  # (BB, NS)

    # All-MXU per-chunk step: outputs + end-of-chunk carry.
    y_ref[...] = (jnp.dot(u, ht_ref[...], preferred_element_type=jnp.float32)
                  + jnp.dot(z0, pt_ref[...], preferred_element_type=jnp.float32))
    z_sc[...] = (jnp.dot(z0, wst_ref[...], preferred_element_type=jnp.float32)
                 + jnp.dot(u, wit_ref[...], preferred_element_type=jnp.float32))


def moog_vcf_rf_forward(input_tensor, *, r, f, sample_rate, gain=None):
    """input_tensor: (batch, seq, 1) float32 -> (batch, seq, 1) float32.

    `gain` (the constructor arg) is accepted for signature fidelity but ignored:
    in the PyTorch module the 'gain' Parameter (init 2.9421) shadows the buffer.
    """
    del gain
    Bsz, S, _ = input_tensor.shape

    # Chunk length: multiple of 128 (v5e) / 256 (v6e, v7x MXU tiles).
    T = 128 if S <= 128 else 256
    Sp = ((S + T - 1) // T) * T

    # Batch on sublanes, padded to a multiple of 8; block over batch if large.
    Bp = ((Bsz + 7) // 8) * 8
    if Bp > 128:
        BB = 128
        Bp = ((Bp + 127) // 128) * 128
    else:
        BB = Bp

    HT, PT, WST, WIT = _build_chunk_operators(r, f, sample_rate, T)
    HT, PT, WST, WIT = map(jnp.asarray, (HT, PT, WST, WIT))

    # (batch, seq, 1) -> (Bp, Sp): batch on sublanes, time on lanes (lane-dense).
    u2 = input_tensor[:, :, 0].astype(jnp.float32)
    u2 = jnp.pad(u2, ((0, Bp - Bsz), (0, Sp - S)))

    y2 = pl.pallas_call(
        _moog_chunk_kernel,
        out_shape=jax.ShapeDtypeStruct((Bp, Sp), jnp.float32),
        grid=(Bp // BB, Sp // T),
        in_specs=[
            pl.BlockSpec((T, _NS * 0 + T), lambda b, n: (0, 0)),   # H'^T   (T, T)
            pl.BlockSpec((_NS, T), lambda b, n: (0, 0)),           # Phi^T  (NS, T)
            pl.BlockSpec((_NS, _NS), lambda b, n: (0, 0)),         # Ws^T   (NS, NS)
            pl.BlockSpec((T, _NS), lambda b, n: (0, 0)),           # Wi^T   (T, NS)
            pl.BlockSpec((BB, T), lambda b, n: (b, n)),            # u chunk
        ],
        out_specs=pl.BlockSpec((BB, T), lambda b, n: (b, n)),      # y chunk
        scratch_shapes=[
            pltpu.VMEM((BB, _NS), jnp.float32),   # carried [x_state, u_prev] per batch block
        ],
        compiler_params=pltpu.CompilerParams(
            # batch blocks are independent (parallel, feeds both v7x TCs);
            # chunk axis carries the recurrence state (arbitrary / sequential).
            dimension_semantics=("parallel", "arbitrary")),
    )(HT, PT, WST, WIT, u2)

    # Drop padding, restore the PyTorch output layout (batch, seq, 1).
    return y2[:Bsz, :S][:, :, None]


def _reference_forward(input_tensor, *, r, f, sample_rate):
    """Pure-JAX reference (lax.scan, per-step float32) matching the PyTorch cell."""
    Bsz, S, _ = input_tensor.shape
    invM, IpkA, kB2, Crow = _build_cell_matrices(r, f, sample_rate)
    invM, IpkA, kB2, Crow = map(jnp.asarray, (invM, IpkA, kB2, Crow))
    u_t = jnp.transpose(input_tensor[:, :, 0]).astype(jnp.float32)   # (S, B)

    def step(carry, u_n):
        x, u_prev = carry                               # x: (4, B)
        s = u_n + u_prev                                # (B,)
        t = IpkA @ x + kB2[:, None] * s[None, :]        # (4, B)
        x_new = invM @ t                                # (4, B)
        y = Crow @ x_new                                # (B,)
        return (x_new, u_n), y

    init = (jnp.zeros((4, Bsz), jnp.float32), jnp.zeros((Bsz,), jnp.float32))
    _, ys = jax.lax.scan(step, init, u_t)               # (S, B)
    return jnp.transpose(ys)[:, :, None]


if __name__ == "__main__":
    r, f, sample_rate = 0.5, 1000.0, 44100.0

    key = jax.random.PRNGKey(0)
    k1, k2 = jax.random.split(key)

    # Case 1: small single chunk (batch=4, seq=16).
    x1 = jax.random.normal(k1, (4, 16, 1), dtype=jnp.float32)
    out1 = jax.block_until_ready(
        moog_vcf_rf_forward(x1, r=r, f=f, sample_rate=sample_rate))
    ref1 = _reference_forward(x1, r=r, f=f, sample_rate=sample_rate)
    assert out1.shape == (4, 16, 1)
    np.testing.assert_allclose(np.asarray(out1), np.asarray(ref1),
                               rtol=5e-4, atol=5e-5)

    # Case 2: multi-chunk with batch & seq padding (exercises the carried state
    # across chunks: batch=3 -> padded to 8 sublanes, seq=300 -> 2 chunks of 256).
    x2 = jax.random.normal(k2, (3, 300, 1), dtype=jnp.float32)
    out2 = jax.block_until_ready(
        moog_vcf_rf_forward(x2, r=r, f=f, sample_rate=sample_rate))
    ref2 = _reference_forward(x2, r=r, f=f, sample_rate=sample_rate)
    assert out2.shape == (3, 300, 1)
    np.testing.assert_allclose(np.asarray(out2), np.asarray(ref2),
                               rtol=5e-4, atol=5e-5)

    print("KERNEL_OK")
</pallas_src>

<mosaic_0001>
module attributes {stable_mosaic.version = 11 : i64} {
  func.func @_moog_chunk_kernel(%arg0: i32, %arg1: i32, %arg2: memref<128x128xf32, #tpu.memory_space<vmem>>, %arg3: memref<8x128xf32, #tpu.memory_space<vmem>>, %arg4: memref<8x8xf32, #tpu.memory_space<vmem>>, %arg5: memref<128x8xf32, #tpu.memory_space<vmem>>, %arg6: memref<8x128xf32, #tpu.memory_space<vmem>>, %arg7: memref<8x128xf32, #tpu.memory_space<vmem>>, %arg8: memref<8x8xf32, #tpu.memory_space<vmem>>) attributes {dimension_semantics = [#tpu.dimension_semantics<parallel>, #tpu.dimension_semantics<arbitrary>], iteration_bounds = array<i64: 1, 1>, scalar_prefetch = 0 : i64, scratch_operands = 1 : i64, tpu.core_type = #tpu.core_type<tc>, window_params = [{pipeline_mode = #tpu.pipeline_mode<synchronous>, transform_indices = @transform_0, window_bounds = array<i64: 128, 128>}, {pipeline_mode = #tpu.pipeline_mode<synchronous>, transform_indices = @transform_1, window_bounds = array<i64: 8, 128>}, {pipeline_mode = #tpu.pipeline_mode<synchronous>, transform_indices = @transform_2, window_bounds = array<i64: 8, 8>}, {pipeline_mode = #tpu.pipeline_mode<synchronous>, transform_indices = @transform_3, window_bounds = array<i64: 128, 8>}, {transform_indices = @transform_4, window_bounds = array<i64: 8, 128>}, {transform_indices = @transform_5, window_bounds = array<i64: 8, 128>}]} {
    %c0_i32 = arith.constant 0 : i32
    %0 = arith.cmpi eq, %arg1, %c0_i32 : i32
    %1 = arith.extui %0 : i1 to i32
    %c0_i32_0 = arith.constant 0 : i32
    %2 = arith.cmpi ne, %1, %c0_i32_0 : i32
    scf.if %2 {
      %cst_19 = arith.constant 0.000000e+00 : f32
      %17 = vector.broadcast %cst_19 : f32 to vector<8x8xf32>
      %c0_20 = arith.constant 0 : index
      %c0_21 = arith.constant 0 : index
      %18 = vector.load %arg8[%c0_20, %c0_21] : memref<8x8xf32, #tpu.memory_space<vmem>>, vector<8x8xf32>
      tpu.vector_store %arg8[%c0_20, %c0_21], %17 {strides = array<i32>} : memref<8x8xf32, #tpu.memory_space<vmem>>, vector<8x8xf32>,
    } else {
    }
    %c0 = arith.constant 0 : index
    %c0_1 = arith.constant 0 : index
    %3 = vector.load %arg6[%c0, %c0_1] : memref<8x128xf32, #tpu.memory_space<vmem>>, vector<8x128xf32>
    %c0_2 = arith.constant 0 : index
    %c0_3 = arith.constant 0 : index
    %4 = vector.load %arg8[%c0_2, %c0_3] : memref<8x8xf32, #tpu.memory_space<vmem>>, vector<8x8xf32>
    %c0_4 = arith.constant 0 : index
    %c0_5 = arith.constant 0 : index
    %5 = vector.load %arg2[%c0_4, %c0_5] : memref<128x128xf32, #tpu.memory_space<vmem>>, vector<128x128xf32>
    %cst = arith.constant dense<0.000000e+00> : vector<8x128xf32>
    %6 = tpu.matmul %3, %5, %cst {dimension_numbers = #tpu.dot_dimension_numbers<[1], [0], [0], [1], [0, 0, 1, 1], [], []>} : vector<8x128xf32>, vector<128x128xf32>, vector<8x128xf32> -> vector<8x128xf32>
    %c0_6 = arith.constant 0 : index
    %c0_7 = arith.constant 0 : index
    %7 = vector.load %arg3[%c0_6, %c0_7] : memref<8x128xf32, #tpu.memory_space<vmem>>, vector<8x128xf32>
    %cst_8 = arith.constant dense<0.000000e+00> : vector<8x128xf32>
    %8 = tpu.matmul %4, %7, %cst_8 {dimension_numbers = #tpu.dot_dimension_numbers<[1], [0], [0], [1], [0, 0, 1, 1], [], []>} : vector<8x8xf32>, vector<8x128xf32>, vector<8x128xf32> -> vector<8x128xf32>
    %9 = arith.addf %6, %8 : vector<8x128xf32>
    %c0_9 = arith.constant 0 : index
    %c0_10 = arith.constant 0 : index
    %10 = vector.load %arg7[%c0_9, %c0_10] : memref<8x128xf32, #tpu.memory_space<vmem>>, vector<8x128xf32>
    tpu.vector_store %arg7[%c0_9, %c0_10], %9 {strides = array<i32>} : memref<8x128xf32, #tpu.memory_space<vmem>>, vector<8x128xf32>,
    %c0_11 = arith.constant 0 : index
    %c0_12 = arith.constant 0 : index
    %11 = vector.load %arg4[%c0_11, %c0_12] : memref<8x8xf32, #tpu.memory_space<vmem>>, vector<8x8xf32>
    %cst_13 = arith.constant dense<0.000000e+00> : vector<8x8xf32>
    %12 = tpu.matmul %4, %11, %cst_13 {dimension_numbers = #tpu.dot_dimension_numbers<[1], [0], [0], [1], [0, 0, 1, 1], [], []>} : vector<8x8xf32>, vector<8x8xf32>, vector<8x8xf32> -> vector<8x8xf32>
    %c0_14 = arith.constant 0 : index
    %c0_15 = arith.constant 0 : index
    %13 = vector.load %arg5[%c0_14, %c0_15] : memref<128x8xf32, #tpu.memory_space<vmem>>, vector<128x8xf32>
    %cst_16 = arith.constant dense<0.000000e+00> : vector<8x8xf32>
    %14 = tpu.matmul %3, %13, %cst_16 {dimension_numbers = #tpu.dot_dimension_numbers<[1], [0], [0], [1], [0, 0, 1, 1], [], []>} : vector<8x128xf32>, vector<128x8xf32>, vector<8x8xf32> -> vector<8x8xf32>
    %15 = arith.addf %12, %14 : vector<8x8xf32>
    %c0_17 = arith.constant 0 : index
    %c0_18 = arith.constant 0 : index
    %16 = vector.load %arg8[%c0_17, %c0_18] : memref<8x8xf32, #tpu.memory_space<vmem>>, vector<8x8xf32>
    tpu.vector_store %arg8[%c0_17, %c0_18], %15 {strides = array<i32>} : memref<8x8xf32, #tpu.memory_space<vmem>>, vector<8x8xf32>,
    return
  }
  func.func @transform_0(%arg0: i32, %arg1: i32) -> (i32, i32) {
    %c0_i32 = arith.constant 0 : i32
    %c0_i32_0 = arith.constant 0 : i32
    %c0_i32_1 = arith.constant 0 : i32
    return %c0_i32, %c0_i32_0 : i32, i32
  }
  func.func @transform_1(%arg0: i32, %arg1: i32) -> (i32, i32) {
    %c0_i32 = arith.constant 0 : i32
    %c0_i32_0 = arith.constant 0 : i32
    %c0_i32_1 = arith.constant 0 : i32
    return %c0_i32, %c0_i32_0 : i32, i32
  }
  func.func @transform_2(%arg0: i32, %arg1: i32) -> (i32, i32) {
    %c0_i32 = arith.constant 0 : i32
    %c0_i32_0 = arith.constant 0 : i32
    %c0_i32_1 = arith.constant 0 : i32
    return %c0_i32, %c0_i32_0 : i32, i32
  }
  func.func @transform_3(%arg0: i32, %arg1: i32) -> (i32, i32) {
    %c0_i32 = arith.constant 0 : i32
    %c0_i32_0 = arith.constant 0 : i32
    %c0_i32_1 = arith.constant 0 : i32
    return %c0_i32, %c0_i32_0 : i32, i32
  }
  func.func @transform_4(%arg0: i32, %arg1: i32) -> (i32, i32) {
    %c0_i32 = arith.constant 0 : i32
    return %arg0, %arg1 : i32, i32
  }
  func.func @transform_5(%arg0: i32, %arg1: i32) -> (i32, i32) {
    %c0_i32 = arith.constant 0 : i32
    return %arg0, %arg1 : i32, i32
  }
}

</mosaic_0001>

<bundles_post_ra>
// kernel: tpu_custom_call.1
= control target key start
LH: loop header
LB: loop body
LE: loop exit
PB: predicated region body
PF: predicated region fallthrough
CT: control target
= control target key end

     0   :  { %10 = vsyncpa [#allocation4], 0  ;;  %s845_s0 = inlined_call_operand.vmem [shape: f32[128,128], index: 0, kind: input, shape index: {}]   ;;  %s846_s1 = inlined_call_operand.vmem [shape: f32[8,128], index: 1, kind: input, shape index: {}]   ;;  %s847_s2 = inlined_call_operand.hbm [shape: f32[8,8], index: 2, kind: input, shape index: {}]   ;;  %s848_s3 = inlined_call_operand.vmem [shape: f32[128,8], index: 3, kind: input, shape index: {}]   ;;  %s849_s4 = inlined_call_operand.hbm [shape: f32[8,128], index: 4, kind: input, shape index: {}]   ;;  %s850_s5 = inlined_call_operand.hbm [shape: f32[8,128], index: 5, kind: output, shape index: {}]  }
   0x1   :  { %11 = vsyncpa [#allocation7], 0 }
   0x2   :  { %12 = vsyncpa [#allocation5], 0  ;;  %s639_s18 = smov [#allocation3]   ;;  %s640_s20 = smov [#allocation6]  }
   0x3   :  { %s23_s19 = sshll.u32 %s639_s18, 4  ;;  %s35_s21 = sshll.u32 %s640_s20, 4  ;;  %s24_s19 = int_to_ptr.vmem [resolvable:$true] %s23_s19  ;;  %s36_s21 = int_to_ptr.vmem [resolvable:$true] %s35_s21 }
   0x4   :  { %s567_s24 = scalar_lea.hbm %s847_s2, 128 }
   0x5   :  { %p568_p0 = scmp.ne.s32.totalorder %s847_s2, %s567_s24  ;;  %p571_p1 = scmp.lt.u32.totalorder %s567_s24, %s847_s2 }
   0x7   :  { %p573_p2 = pnand %p571_p1, %p568_p0 }
   0x9   :  { %576 = shalt.err (!%p573_p2)
}
   0xa   :  { %s577_s29 = scalar_lea.vmem %s24_s19, 128  ;;  %p582_p4 = scmp.lt.s32.totalorder %s24_s19, %s24_s19 }
   0xb   :  { %p578_p3 = scmp.ne.s32.totalorder %s24_s19, %s577_s29  ;;  %p583_p5 = scmp.lt.s32.totalorder %s577_s29, %s577_s29 }
   0xd   :  { %p584_p6 = por %p583_p5, %p582_p4 }
   0xf   :  { %p585_p7 = pnand %p584_p6, %p578_p3 }
  0x11   :  { %588 = shalt.err (!%p585_p7)
}
  0x12   :  { %26 = dma.hbm_to_vmem [thread:$0]  %s847_s2, 128, %s24_s19, [#allocation4]  }
  0x13   :  { %s589_s9 = scalar_lea.hbm %s849_s4, 128 }
  0x14   :  { %p590_p8 = scmp.ne.s32.totalorder %s849_s4, %s589_s9  ;;  %p593_p9 = scmp.lt.u32.totalorder %s589_s9, %s849_s4 }
  0x16   :  { %p595_p10 = pnand %p593_p9, %p590_p8 }
  0x18   :  { %598 = shalt.err (!%p595_p10)
}
  0x19   :  { %s599_s14 = scalar_lea.vmem %s36_s21, 128  ;;  %p604_p12 = scmp.lt.s32.totalorder %s36_s21, %s36_s21 }
  0x1a   :  { %p600_p11 = scmp.ne.s32.totalorder %s36_s21, %s599_s14  ;;  %p605_p13 = scmp.lt.s32.totalorder %s599_s14, %s599_s14 }
  0x1c   :  { %p606_p0 = por %p605_p13, %p604_p12 }
  0x1e   :  { %p607_p1 = pnand %p606_p0, %p600_p11 }
  0x20   :  { %610 = shalt.err (!%p607_p1)
}
  0x21   :  { %38 = dma.hbm_to_vmem [thread:$0]  %s849_s4, 128, %s36_s21, [#allocation7]  }
  0x22   :  { %633 = dma.done.wait [#allocation4], 128  }
  0x23   :  { %634 = vsyncadd [#allocation4], 4294967168 }
  0x24   :  { %635 = dma.done.wait [#allocation7], 128  }
  0x25   :  { %636 = vsyncadd [#allocation7], 4294967168  ;;  %vm49_vm0 = vcmask 64512   ;;  %v641_v0 = vmov 0.0   ;;  %vm642_vm1 = vmmov 0   ;;  %v643_v1 = vmov 0.0|0.0  }
  0x26   :  { %429 = vmatprep.subr.mxu0 %v641_v0  ;;  %431 = vmatprep.mubr.msk.f32.mxu0 %vm642_vm1, %v641_v0  ;;  %50 = vst.msk [vmem:[#allocation2] sm:$0xff] %vm49_vm0, %v641_v0  ;;  %v69_v2 = vld [vmem:[%s846_s1] sm:$0xff]  ;;  %v54_v4 = vld [vmem:[%s845_s0 + $0x8] sm:$0xff]  ;;  %v55_v10 = vld [vmem:[%s845_s0 + $0x10] sm:$0xff] }
  0x27   :  { %533 = vmatprep.subr.bf16.mxu1 %v643_v1  ;;  %501 = vmatprep.mubr.msk.f32.mxu1 %vm642_vm1, %v641_v0  ;;  %v53_v3 = vld [vmem:[%s845_s0] sm:$0xff]  ;;  %v217_v8 = vld [vmem:[%s848_s3 + $0x8] sm:$0xff]  ;;  %v56_v11 = vld [vmem:[%s845_s0 + $0x18] sm:$0xff] }
  0x28   :  { %430 = vmatpush3.msra.mxu0 %v69_v2  ;;  %v510_v6 = vpack.c.bf16 %v54_v4, %v53_v3  ;;  %v216_v7 = vld [vmem:[%s848_s3] sm:$0xff]  ;;  %v218_v12 = vld [vmem:[%s848_s3 + $0x10] sm:$0xff]  ;;  %v513_v13 = vpack.c.bf16 %v56_v11, %v55_v10  ;;  %v219_v14 = vld [vmem:[%s848_s3 + $0x18] sm:$0xff] }
  0x29   :  { %509 = vmatprep.subr.bf16.mxu0 %v643_v1  ;;  %v534_v9 = vpack.c.bf16 %v217_v8, %v216_v7  ;;  %v537_v15 = vpack.c.bf16 %v219_v14, %v218_v12  ;;  %v57_v16 = vld [vmem:[%s845_s0 + $0x20] sm:$0xff]  ;;  %v58_v17 = vld [vmem:[%s845_s0 + $0x28] sm:$0xff]  ;;  %v59_v22 = vld [vmem:[%s845_s0 + $0x30] sm:$0xff] }
  0x2a   :  { %v220_v18 = vld [vmem:[%s848_s3 + $0x20] sm:$0xff]  ;;  %v221_v19 = vld [vmem:[%s848_s3 + $0x28] sm:$0xff]  ;;  %v516_v20 = vpack.c.bf16 %v58_v17, %v57_v16  ;;  %v60_v23 = vld [vmem:[%s845_s0 + $0x38] sm:$0xff] }
  0x2b   :  { %535 = vmatpush3.bf16.msra.mxu1 %v534_v9  ;;  %v540_v21 = vpack.c.bf16 %v221_v19, %v220_v18  ;;  %v222_v24 = vld [vmem:[%s848_s3 + $0x30] sm:$0xff]  ;;  %v223_v25 = vld [vmem:[%s848_s3 + $0x38] sm:$0xff]  ;;  %v519_v26 = vpack.c.bf16 %v60_v23, %v59_v22  ;;  %v61_v28 = vld [vmem:[%s845_s0 + $0x40] sm:$0xff] }
  0x2c   :  { %536 = vmatprep.subr.bf16.mxu1 %v643_v1  ;;  %v543_v27 = vpack.c.bf16 %v223_v25, %v222_v24  ;;  %v62_v29 = vld [vmem:[%s845_s0 + $0x48] sm:$0xff]  ;;  %v224_v30 = vld [vmem:[%s848_s3 + $0x40] sm:$0xff]  ;;  %v63_v34 = vld [vmem:[%s845_s0 + $0x50] sm:$0xff] }
  0x2d   :  { %v716_v5 = vld [vmem:[#allocation2] sm:$0xff]  ;;  %v225_v31 = vld [vmem:[%s848_s3 + $0x48] sm:$0xff]  ;;  %v522_v32 = vpack.c.bf16 %v62_v29, %v61_v28  ;;  %v64_v35 = vld [vmem:[%s845_s0 + $0x58] sm:$0xff] }
  0x2e   :  { %432 = vmatmul.mubr.msk.f32.vlgmr.msra.gmra.mrb[0].mxu0 %vm49_vm0, %v716_v5  ;;  %v546_v33 = vpack.c.bf16 %v225_v31, %v224_v30  ;;  %v226_v36 = vld [vmem:[%s848_s3 + $0x50] sm:$0xff]  ;;  %v227_v37 = vld [vmem:[%s848_s3 + $0x58] sm:$0xff]  ;;  %v525_v38 = vpack.c.bf16 %v64_v35, %v63_v34  ;;  %v65_v40 = vld [vmem:[%s845_s0 + $0x60] sm:$0xff] }
  0x2f   :  { %511 = vmatpush3.bf16.msra.mxu0 %v510_v6  ;;  %466 = vmatprep.mubr.msk.f32.mxu0 %vm642_vm1, %v641_v0  ;;  %v549_v39 = vpack.c.bf16 %v227_v37, %v226_v36  ;;  %v66_v41 = vld [vmem:[%s845_s0 + $0x68] sm:$0xff]  ;;  %v228_v42 = vld [vmem:[%s848_s3 + $0x60] sm:$0xff]  ;;  %v67_v46 = vld [vmem:[%s845_s0 + $0x70] sm:$0xff] }
  0x30   :  { %512 = vmatprep.subr.bf16.mxu0 %v643_v1  ;;  %538 = vmatpush3.bf16.msra.mxu1 %v537_v15  ;;  %v229_v43 = vld [vmem:[%s848_s3 + $0x68] sm:$0xff]  ;;  %v528_v44 = vpack.c.bf16 %v66_v41, %v65_v40  ;;  %v68_v47 = vld [vmem:[%s845_s0 + $0x78] sm:$0xff]  ;;  %v230_v48 = vld [vmem:[%s848_s3 + $0x70] sm:$0xff]  ;;  %s644_s0 = smov [#allocation8]  }
  0x31   :  { %539 = vmatprep.subr.bf16.mxu1 %v643_v1  ;;  %v552_v45 = vpack.c.bf16 %v229_v43, %v228_v42  ;;  %v231_v49 = vld [vmem:[%s848_s3 + $0x78] sm:$0xff]  ;;  %v531_v50 = vpack.c.bf16 %v68_v47, %v67_v46  ;;  %v51_v52 = vld [vmem:[#allocation6] sm:$0xff]  ;;  %v215_v53 = vld [vmem:[#allocation3] sm:$0xff]  ;;  %s379_s3 = sshll.u32 %s644_s0, 4  ;;  %s380_s3 = int_to_ptr.vmem [resolvable:$true] %s379_s3 }
  0x32   :  { %v555_v51 = vpack.c.bf16 %v231_v49, %v230_v48  ;;  %s611_s1 = scalar_lea.vmem %s380_s3, 128  ;;  %p616_p3 = scmp.lt.s32.totalorder %s380_s3, %s380_s3 }
  0x33   :  { %514 = vmatpush3.bf16.msra.mxu0 %v513_v13  ;;  %p612_p2 = scmp.ne.s32.totalorder %s380_s3, %s611_s1  ;;  %p617_p4 = scmp.lt.s32.totalorder %s611_s1, %s611_s1 }
  0x34   :  { %515 = vmatprep.subr.bf16.mxu0 %v643_v1  ;;  %541 = vmatpush3.bf16.msra.mxu1 %v540_v21 }
  0x35   :  { %542 = vmatprep.subr.bf16.mxu1 %v643_v1  ;;  %p618_p5 = por %p617_p4, %p616_p3 }
  0x37   :  { %517 = vmatpush3.bf16.msra.mxu0 %v516_v20  ;;  %p619_p6 = pnand %p618_p5, %p612_p2 }
  0x38   :  { %518 = vmatprep.subr.bf16.mxu0 %v643_v1  ;;  %544 = vmatpush3.bf16.msra.mxu1 %v543_v27 }
  0x39   :  { %545 = vmatprep.subr.bf16.mxu1 %v643_v1 }
  0x3b   :  { %520 = vmatpush3.bf16.msra.mxu0 %v519_v26 }
  0x3c   :  { %521 = vmatprep.subr.bf16.mxu0 %v643_v1  ;;  %547 = vmatpush3.bf16.msra.mxu1 %v546_v33 }
  0x3d   :  { %548 = vmatprep.subr.bf16.mxu1 %v643_v1 }
  0x3f   :  { %523 = vmatpush3.bf16.msra.mxu0 %v522_v32 }
  0x40   :  { %524 = vmatprep.subr.bf16.mxu0 %v643_v1  ;;  %550 = vmatpush3.bf16.msra.mxu1 %v549_v39 }
  0x41   :  { %551 = vmatprep.subr.bf16.mxu1 %v643_v1 }
  0x43   :  { %526 = vmatpush3.bf16.msra.mxu0 %v525_v38 }
  0x44   :  { %527 = vmatprep.subr.bf16.mxu0 %v643_v1  ;;  %553 = vmatpush3.bf16.msra.mxu1 %v552_v45 }
  0x45   :  { %554 = vmatprep.subr.bf16.mxu1 %v643_v1 }
  0x47   :  { %529 = vmatpush3.bf16.msra.mxu0 %v528_v44 }
  0x48   :  { %530 = vmatprep.subr.bf16.mxu0 %v643_v1  ;;  %556 = vmatpush3.bf16.msra.mxu1 %v555_v51 }
  0x49   :  { %504 = vmatprep.subr.mxu1 %v641_v0 }
  0x4b   :  { %532 = vmatpush3.bf16.msra.mxu0 %v531_v50  ;;  %502 = vmatmul.mubr.f32.vlgmr.msra.gmra.mrb[0].mxu1 %v51_v52 }
  0x4c   :  { %505 = vmatpush3.msra.mxu1 %v215_v53  ;;  %506 = vmatprep.mubr.msk.f32.mxu1 %vm642_vm1, %v641_v0 }
  0x4e   :  { %467 = vmatmul.mubr.f32.vlgmr.msra.gmra.mrb[0].mxu0 %v51_v52 }
  0x53   :  { %507 = vmatmul.mubr.msk.f32.vlgmr.msra.gmra.mrb[0].mxu1 %vm49_vm0, %v716_v5 }
 0x121   :  { %v210_v54 = vpop.f32.mrb[0].mxu0 }
 0x122   :  { %214 = vst [vmem:[#allocation8] sm:$0xff] %v210_v54  ;;  %v468_v55 = vpop.f32.mrb[1].mxu0 }
 0x123   :  { %622 = shalt.err (!%p619_p6)
}
 0x124   :  { %s623_s27 = scalar_lea.hbm %s850_s5, 128 }
 0x125   :  { %p624_p7 = scmp.ne.s32.totalorder %s850_s5, %s623_s27  ;;  %p627_p8 = scmp.lt.u32.totalorder %s623_s27, %s850_s5 }
 0x127   :  { %p629_p9 = pnand %p627_p8, %p624_p7 }
 0x129   :  { %632 = shalt.err (!%p629_p9)
}
 0x12a   :  { %382 = dma.vmem_to_hbm [thread:$0]  %s380_s3, 128, %s850_s5, [#allocation5]   ;;  %v368_v56 = vpop.f32.mrb[0].mxu1 }
 0x12b   :  { %372 = vst.msk [vmem:[#allocation2] sm:$0xff] %vm49_vm0, %v368_v56  ;;  %v508_v57 = vpop.f32.mrb[1].mxu1 }
 0x12c   :  { %637 = dma.done.wait [#allocation5], 128  }
 0x12d   :  { %638 = vsyncadd [#allocation5], 4294967168 }
 0x12e   :  { %386 = vsyncpa [#allocation4], 1 }
 0x12f   :  { %387 = vsyncpa [#allocation7], 1 }
 0x130   :  { %388 = vsyncpa [#allocation5], 1 }

</bundles_post_ra>
